<compile_context>
chip_gen: v5e
topology: v5e:2x2
jax: 0.10.0
libtpu: 0.0.40
codegen_flags: <defaults>
</compile_context>

<pallas_src>
import math
import numpy as np
import jax
import jax.numpy as jnp
from jax.experimental import pallas as pl
from jax.experimental.pallas import tpu as pltpu

# ----- small, forward-consistent configuration -----
B = 2              # batch
W = 8              # config.window_size (small)
HID = 32           # config.hidden_size (small)
CIN = 4            # input channels (one-hot nucleotides)
C1, C2 = 64, 128   # conv channels (fixed by the module)
NUM_ACTIONS = 3
KSZ = 3            # conv kernel size
CONV2_OFF = 16     # row offset of conv2 weights in the packed conv slab
                   # (multiple of 16 keeps bf16 sublane packing aligned)


# --------------------------- Pallas kernel ---------------------------
def rainbow_kernel(x_ref, cw_ref, wf_ref, hw_ref, b_ref, q_ref):
    """One batch tile of the RainbowDQN forward pass (both sequence halves fused)."""
    f32, bf16 = jnp.float32, jnp.bfloat16
    R = x_ref.shape[0]            # rows = batch_tile * 2 halves * W positions
    bt = q_ref.shape[0]           # batch tile

    # ---- unpack weight / bias slabs (static slices of VMEM-resident refs) ----
    w1 = cw_ref[0:KSZ * CIN, 0:C1]                       # (12, 64)   bf16
    w2 = cw_ref[CONV2_OFF:CONV2_OFF + KSZ * C1, :]       # (192, 128) bf16
    wh1 = hw_ref[0:HID, :]                               # (32, 32)   bf16
    wh2 = hw_ref[HID:2 * HID, :]                         # (32, 32)   bf16
    wq = hw_ref[2 * HID:3 * HID, :]                      # (32, 32)   bf16 (cols >= 3 are zero)
    b1 = b_ref[0:1, 0:C1]
    b2 = b_ref[1:2, 0:C2]
    bf = b_ref[2:3, 0:HID]
    bh1 = b_ref[3:4, 0:HID]
    bh2 = b_ref[4:5, 0:HID]
    bq = b_ref[5:6, 0:NUM_ACTIONS]

    # ---- Conv1d(4 -> 64, k=3, pad=1): one im2col matmul over all (batch, half) rows ----
    h1 = jnp.maximum(
        jnp.dot(x_ref[...], w1, preferred_element_type=f32) + b1, 0.0)        # (R, 64) f32

    # ---- Conv1d(64 -> 128, k=3, pad=1): neighbour taps on the flat activation ----
    # rows are ordered (batch, half, position); position == row % W.
    pos = jax.lax.broadcasted_iota(jnp.int32, (R, C1), 0) % W
    zrow = jnp.zeros((1, C1), f32)
    left = jnp.where(pos == 0, 0.0,
                     jnp.concatenate([zrow, h1[:R - 1, :]], axis=0))          # x[l-1]
    right = jnp.where(pos == W - 1, 0.0,
                      jnp.concatenate([h1[1:, :], zrow], axis=0))             # x[l+1]
    hcol = jnp.concatenate([left, h1, right], axis=-1).astype(bf16)           # (R, 192)
    h2 = jnp.maximum(
        jnp.dot(hcol, w2, preferred_element_type=f32) + b2, 0.0)              # (R, 128) f32
    # AdaptiveAvgPool1d(W) on a length-W input is the identity.

    # ---- feature layer: (batch, half, l) rows -> single reshape gives (half, l, c) cols ----
    feats = h2.reshape(bt, 2 * W * C2).astype(bf16)                           # (bt, 2048)
    x = jnp.maximum(
        jnp.dot(feats, wf_ref[...], preferred_element_type=f32) + bf, 0.0)
    # TODO(synk): dropout omitted (identity / eval semantics).

    x = jnp.maximum(jnp.dot(x.astype(bf16), wh1, preferred_element_type=f32) + bh1, 0.0)
    x = jnp.maximum(jnp.dot(x.astype(bf16), wh2, preferred_element_type=f32) + bh2, 0.0)

    # ---- dueling heads: v + a - mean(a) is already folded into wq/bq host-side ----
    q = jnp.dot(x.astype(bf16), wq, preferred_element_type=f32)[:, :NUM_ACTIONS] + bq
    q_ref[...] = q


# ---------------- one-time weight layout prep (hoisted out of the per-call path) ----------------
def prepare_params(params):
    f32, bf16 = jnp.float32, jnp.bfloat16

    # conv weights: (Cout, Cin, K) -> im2col weight (K*Cin, Cout), row = k*Cin + ci;
    # both convs packed into one bf16 slab.
    w1 = jnp.transpose(params['conv1_w'], (2, 1, 0)).reshape(KSZ * CIN, C1)
    w2 = jnp.transpose(params['conv2_w'], (2, 1, 0)).reshape(KSZ * C1, C2)
    cw = jnp.zeros((CONV2_OFF + KSZ * C1, C2), f32)
    cw = cw.at[:KSZ * CIN, :C1].set(w1)
    cw = cw.at[CONV2_OFF:, :].set(w2)

    # feature-layer columns are (half, channel, position) in PyTorch flatten(1);
    # regroup to the kernel's (half, position, channel) order.
    wf4 = params['feat_w'].reshape(HID, 2, C2, W)                  # (h, half, c, l)
    wf = jnp.transpose(wf4, (1, 3, 2, 0)).reshape(2 * W * C2, HID)

    # dueling combine folded into the head weights: q = [v | a] @ M, M = [[1,1,1]; I3 - 1/3]
    # (exactly linear, numerically identical to v + a - mean(a)).
    M = jnp.concatenate([jnp.ones((1, NUM_ACTIONS), f32),
                         jnp.eye(NUM_ACTIONS, dtype=f32) - 1.0 / NUM_ACTIONS], axis=0)  # (4, 3)
    wq = jnp.concatenate([params['v_w'].T, params['a_w'].T], axis=1) @ M      # (HID, 3)
    bq = jnp.concatenate([params['v_b'], params['a_b']])[None, :] @ M         # (1, 3)

    # hidden + (folded) head weights in one bf16 slab.
    hw = jnp.zeros((3 * HID, HID), f32)
    hw = hw.at[0:HID, :].set(params['h1_w'].T)
    hw = hw.at[HID:2 * HID, :].set(params['h2_w'].T)
    hw = hw.at[2 * HID:, :NUM_ACTIONS].set(wq)

    # all biases in one f32 slab (stay f32: they add to the f32 accumulators).
    bs = jnp.zeros((8, 128), f32)
    bs = bs.at[0, :C1].set(params['conv1_b'])
    bs = bs.at[1, :C2].set(params['conv2_b'])
    bs = bs.at[2, :HID].set(params['feat_b'])
    bs = bs.at[3, :HID].set(params['h1_b'])
    bs = bs.at[4, :HID].set(params['h2_b'])
    bs = bs.at[5, :NUM_ACTIONS].set(bq[0])

    return dict(cw=cw.astype(bf16), wf=wf.astype(bf16), hw=hw.astype(bf16), bs=bs)


# --------------------------- wrapper (per-call glue) ---------------------------
def rainbow_dqn_pallas(state, p, batch_tile=None):
    Bq = state.shape[0]
    bt = Bq if batch_tile is None else batch_tile
    assert Bq % bt == 0
    ng = Bq // bt

    # split halves (PyTorch: state[:, :, :W] / state[:, :, W:]), channels-last, and lay
    # the rows out as (batch, half, position): the whole batch tile goes through the
    # shared conv weights as one LHS and the feature operand is a plain reshape in-kernel.
    xs = jnp.transpose(state.reshape(Bq, CIN, 2, W), (0, 2, 3, 1))    # (B, 2, W, CIN)
    xp = jnp.pad(xs, ((0, 0), (0, 0), (1, 1), (0, 0)))                # (B, 2, W+2, CIN)
    # im2col for conv1: taps k=0,1,2 -> x[l-1], x[l], x[l+1]
    x1col = jnp.concatenate([xp[:, :, k:k + W, :] for k in range(KSZ)], axis=-1)
    x1col = x1col.reshape(Bq * 2 * W, KSZ * CIN).astype(jnp.bfloat16)

    row_blk = bt * 2 * W
    return pl.pallas_call(
        rainbow_kernel,
        out_shape=jax.ShapeDtypeStruct((Bq, NUM_ACTIONS), jnp.float32),
        grid=(ng,),
        in_specs=[
            pl.BlockSpec((row_blk, KSZ * CIN), lambda i: (i, 0)),   # per-tile activations
            pl.BlockSpec(p['cw'].shape, lambda i: (0, 0)),          # conv weight slab
            pl.BlockSpec(p['wf'].shape, lambda i: (0, 0)),          # feature weight
            pl.BlockSpec(p['hw'].shape, lambda i: (0, 0)),          # hidden/head weight slab
            pl.BlockSpec(p['bs'].shape, lambda i: (0, 0)),          # bias slab
        ],
        out_specs=pl.BlockSpec((bt, NUM_ACTIONS), lambda i: (i, 0)),
        compiler_params=pltpu.CompilerParams(dimension_semantics=("parallel",)),
    )(x1col, p['cw'], p['wf'], p['hw'], p['bs'])


# --------------------- deterministic parameter init ---------------------
def _scale_noise(key, size):
    x = jax.random.normal(key, (size,), dtype=jnp.float32)
    return jnp.sign(x) * jnp.sqrt(jnp.abs(x))


def noisy_linear_params(key, in_f, out_f, sigma_init=0.5):
    k1, k2, k3, k4 = jax.random.split(key, 4)
    mu_range = 1.0 / math.sqrt(in_f)
    w_mu = jax.random.uniform(k1, (out_f, in_f), jnp.float32, -mu_range, mu_range)
    b_mu = jax.random.uniform(k2, (out_f,), jnp.float32, -mu_range, mu_range)
    w_sig = jnp.full((out_f, in_f), sigma_init / math.sqrt(in_f), jnp.float32)
    b_sig = jnp.full((out_f,), sigma_init / math.sqrt(out_f), jnp.float32)
    eps_in = _scale_noise(k3, in_f)
    eps_out = _scale_noise(k4, out_f)
    w = w_mu + w_sig * jnp.outer(eps_out, eps_in)   # effective noisy weight (deterministic)
    b = b_mu + b_sig * eps_out
    return w, b


def conv1d_params(key, cout, cin, ksz=3):
    k1, k2 = jax.random.split(key)
    bound = 1.0 / math.sqrt(cin * ksz)
    w = jax.random.uniform(k1, (cout, cin, ksz), jnp.float32, -bound, bound)
    b = jax.random.uniform(k2, (cout,), jnp.float32, -bound, bound)
    return w, b


# --------------------------- pure-JAX reference ---------------------------
def ref_forward(state, params):
    def conv1d(x, w, b):
        y = jax.lax.conv_general_dilated(
            x, w, window_strides=(1,), padding=[(1, 1)],
            dimension_numbers=('NCH', 'OIH', 'NCH'))
        return y + b[None, :, None]

    def encode(x):
        h = jax.nn.relu(conv1d(x, params['conv1_w'], params['conv1_b']))
        h = jax.nn.relu(conv1d(h, params['conv2_w'], params['conv2_b']))
        return h.reshape(h.shape[0], -1)          # flatten(1), channel-major

    enc1 = encode(state[:, :, :W])
    enc2 = encode(state[:, :, W:])
    feats = jnp.concatenate([enc1, enc2], axis=1)
    x = jax.nn.relu(feats @ params['feat_w'].T + params['feat_b'])
    x = jax.nn.relu(x @ params['h1_w'].T + params['h1_b'])
    x = jax.nn.relu(x @ params['h2_w'].T + params['h2_b'])
    v = x @ params['v_w'].T + params['v_b']
    a = x @ params['a_w'].T + params['a_b']
    return v + a - a.mean(axis=1, keepdims=True)


if __name__ == "__main__":
    key = jax.random.PRNGKey(0)
    ks = jax.random.split(key, 8)
    input_size = C2 * W * 2

    params = {}
    params['conv1_w'], params['conv1_b'] = conv1d_params(ks[0], C1, CIN)
    params['conv2_w'], params['conv2_b'] = conv1d_params(ks[1], C2, C1)
    params['feat_w'], params['feat_b'] = noisy_linear_params(ks[2], input_size, HID)
    params['h1_w'], params['h1_b'] = noisy_linear_params(ks[3], HID, HID)
    params['h2_w'], params['h2_b'] = noisy_linear_params(ks[4], HID, HID)
    params['v_w'], params['v_b'] = noisy_linear_params(ks[5], HID, 1)
    params['a_w'], params['a_b'] = noisy_linear_params(ks[6], HID, NUM_ACTIONS)

    state = jax.random.normal(ks[7], (B, CIN, 2 * W), dtype=jnp.float32)

    # Weight layout prep (bf16 packing, dueling fold) runs once; only input prep + the
    # kernel are on the per-call path.
    prepped = jax.tree_util.tree_map(jax.block_until_ready, prepare_params(params))
    fwd = jax.jit(rainbow_dqn_pallas)

    q = jax.block_until_ready(fwd(state, prepped))
    q_ref = np.asarray(ref_forward(state, params))

    if not np.allclose(np.asarray(q), q_ref, rtol=2e-2, atol=2e-2):
        raise RuntimeError(f"mismatch: kernel={np.asarray(q)} ref={q_ref}")
    print("KERNEL_OK")
</pallas_src>

<mosaic_0001>
module attributes {stable_mosaic.version = 11 : i64} {
  func.func @rainbow_kernel(%arg0: i32, %arg1: memref<32x12xbf16, #tpu.memory_space<vmem>>, %arg2: memref<208x128xbf16, #tpu.memory_space<vmem>>, %arg3: memref<2048x32xbf16, #tpu.memory_space<vmem>>, %arg4: memref<96x32xbf16, #tpu.memory_space<vmem>>, %arg5: memref<8x128xf32, #tpu.memory_space<vmem>>, %arg6: memref<2x3xf32, #tpu.memory_space<vmem>>) attributes {dimension_semantics = [#tpu.dimension_semantics<parallel>], iteration_bounds = array<i64: 1>, scalar_prefetch = 0 : i64, scratch_operands = 0 : i64, tpu.core_type = #tpu.core_type<tc>, window_params = [{transform_indices = @transform_0, window_bounds = array<i64: 32, 12>}, {pipeline_mode = #tpu.pipeline_mode<synchronous>, transform_indices = @transform_1, window_bounds = array<i64: 208, 128>}, {pipeline_mode = #tpu.pipeline_mode<synchronous>, transform_indices = @transform_2, window_bounds = array<i64: 2048, 32>}, {pipeline_mode = #tpu.pipeline_mode<synchronous>, transform_indices = @transform_3, window_bounds = array<i64: 96, 32>}, {pipeline_mode = #tpu.pipeline_mode<synchronous>, transform_indices = @transform_4, window_bounds = array<i64: 8, 128>}, {transform_indices = @transform_5, window_bounds = array<i64: 2, 3>}]} {
    %c0 = arith.constant 0 : index
    %c0_0 = arith.constant 0 : index
    %0 = vector.load %arg2[%c0, %c0_0] : memref<208x128xbf16, #tpu.memory_space<vmem>>, vector<12x64xbf16>
    %c16 = arith.constant 16 : index
    %c0_1 = arith.constant 0 : index
    %1 = vector.load %arg2[%c16, %c0_1] : memref<208x128xbf16, #tpu.memory_space<vmem>>, vector<192x128xbf16>
    %c0_2 = arith.constant 0 : index
    %c0_3 = arith.constant 0 : index
    %2 = vector.load %arg4[%c0_2, %c0_3] : memref<96x32xbf16, #tpu.memory_space<vmem>>, vector<32x32xbf16>
    %c32 = arith.constant 32 : index
    %c0_4 = arith.constant 0 : index
    %3 = vector.load %arg4[%c32, %c0_4] : memref<96x32xbf16, #tpu.memory_space<vmem>>, vector<32x32xbf16>
    %c64 = arith.constant 64 : index
    %c0_5 = arith.constant 0 : index
    %4 = vector.load %arg4[%c64, %c0_5] : memref<96x32xbf16, #tpu.memory_space<vmem>>, vector<32x32xbf16>
    %c0_6 = arith.constant 0 : index
    %c0_7 = arith.constant 0 : index
    %5 = vector.load %arg5[%c0_6, %c0_7] : memref<8x128xf32, #tpu.memory_space<vmem>>, vector<1x64xf32>
    %c1 = arith.constant 1 : index
    %c0_8 = arith.constant 0 : index
    %6 = vector.load %arg5[%c1, %c0_8] : memref<8x128xf32, #tpu.memory_space<vmem>>, vector<1x128xf32>
    %c2 = arith.constant 2 : index
    %c0_9 = arith.constant 0 : index
    %7 = vector.load %arg5[%c2, %c0_9] : memref<8x128xf32, #tpu.memory_space<vmem>>, vector<1x32xf32>
    %c3 = arith.constant 3 : index
    %c0_10 = arith.constant 0 : index
    %8 = vector.load %arg5[%c3, %c0_10] : memref<8x128xf32, #tpu.memory_space<vmem>>, vector<1x32xf32>
    %c4 = arith.constant 4 : index
    %c0_11 = arith.constant 0 : index
    %9 = vector.load %arg5[%c4, %c0_11] : memref<8x128xf32, #tpu.memory_space<vmem>>, vector<1x32xf32>
    %c5 = arith.constant 5 : index
    %c0_12 = arith.constant 0 : index
    %10 = vector.load %arg5[%c5, %c0_12] : memref<8x128xf32, #tpu.memory_space<vmem>>, vector<1x3xf32>
    %c0_13 = arith.constant 0 : index
    %c0_14 = arith.constant 0 : index
    %11 = vector.load %arg1[%c0_13, %c0_14] : memref<32x12xbf16, #tpu.memory_space<vmem>>, vector<32x12xbf16>
    %cst = arith.constant dense<0.000000e+00> : vector<32x64xf32>
    %12 = tpu.matmul %11, %0, %cst {dimension_numbers = #tpu.dot_dimension_numbers<[1], [0], [0], [1], [0, 0, 1, 1], [], []>} : vector<32x12xbf16>, vector<12x64xbf16>, vector<32x64xf32> -> vector<32x64xf32>
    %13 = vector.broadcast %5 : vector<1x64xf32> to vector<32x64xf32>
    %14 = arith.addf %12, %13 : vector<32x64xf32>
    %cst_15 = arith.constant 0.000000e+00 : f32
    %15 = vector.broadcast %cst_15 : f32 to vector<32x64xf32>
    %16 = arith.maximumf %14, %15 : vector<32x64xf32>
    %17 = tpu.iota {dimensions = array<i32: 0>} : vector<32x64xi32>
    %c8_i32 = arith.constant 8 : i32
    %c0_i32 = arith.constant 0 : i32
    %18 = arith.cmpi eq, %c8_i32, %c0_i32 : i32
    %c1_i32 = arith.constant 1 : i32
    %19 = arith.select %18, %c1_i32, %c8_i32 : i32
    %20 = vector.broadcast %19 : i32 to vector<32x64xi32>
    %21 = arith.remsi %17, %20 : vector<32x64xi32>
    %c0_i32_16 = arith.constant 0 : i32
    %22 = vector.broadcast %c0_i32_16 : i32 to vector<32x64xi32>
    %23 = arith.cmpi ne, %21, %22 : vector<32x64xi32>
    %c0_i32_17 = arith.constant 0 : i32
    %24 = vector.broadcast %c0_i32_17 : i32 to vector<32x64xi32>
    %25 = arith.cmpi slt, %21, %24 : vector<32x64xi32>
    %c0_i32_18 = arith.constant 0 : i32
    %26 = arith.cmpi slt, %19, %c0_i32_18 : i32
    %27 = vector.broadcast %26 : i1 to vector<32x64xi1>
    %28 = vector.broadcast %27 : vector<32x64xi1> to vector<32x64xi1>
    %29 = arith.xori %25, %28 : vector<32x64xi1>
    %30 = arith.andi %29, %23 : vector<32x64xi1>
    %31 = vector.broadcast %19 : i32 to vector<32x64xi32>
    %32 = arith.addi %21, %31 : vector<32x64xi32>
    %33 = arith.select %30, %32, %21 : vector<32x64xi1>, vector<32x64xi32>
    %cst_19 = arith.constant 0.000000e+00 : f32
    %34 = vector.broadcast %cst_19 : f32 to vector<1x64xf32>
    %c0_i32_20 = arith.constant 0 : i32
    %35 = vector.broadcast %c0_i32_20 : i32 to vector<32x64xi32>
    %36 = arith.cmpi eq, %33, %35 : vector<32x64xi32>
    %37 = vector.extract_strided_slice %16 {offsets = [0, 0], sizes = [31, 64], strides = [1, 1]} : vector<32x64xf32> to vector<31x64xf32>
    %38 = tpu.concatenate %34, %37 in 0 : vector<1x64xf32>, vector<31x64xf32> -> vector<32x64xf32>
    %cst_21 = arith.constant 0.000000e+00 : f32
    %39 = vector.broadcast %cst_21 : f32 to vector<32x64xf32>
    %40 = arith.select %36, %39, %38 : vector<32x64xi1>, vector<32x64xf32>
    %c7_i32 = arith.constant 7 : i32
    %41 = vector.broadcast %c7_i32 : i32 to vector<32x64xi32>
    %42 = arith.cmpi eq, %33, %41 : vector<32x64xi32>
    %43 = vector.extract_strided_slice %16 {offsets = [1, 0], sizes = [31, 64], strides = [1, 1]} : vector<32x64xf32> to vector<31x64xf32>
    %44 = tpu.concatenate %43, %34 in 0 : vector<31x64xf32>, vector<1x64xf32> -> vector<32x64xf32>
    %cst_22 = arith.constant 0.000000e+00 : f32
    %45 = vector.broadcast %cst_22 : f32 to vector<32x64xf32>
    %46 = arith.select %42, %45, %44 : vector<32x64xi1>, vector<32x64xf32>
    %47 = tpu.concatenate %40, %16, %46 in 1 : vector<32x64xf32>, vector<32x64xf32>, vector<32x64xf32> -> vector<32x192xf32>
    %48 = arith.truncf %47 : vector<32x192xf32> to vector<32x192xbf16>
    %cst_23 = arith.constant dense<0.000000e+00> : vector<32x128xf32>
    %49 = tpu.matmul %48, %1, %cst_23 {dimension_numbers = #tpu.dot_dimension_numbers<[1], [0], [0], [1], [0, 0, 1, 1], [], []>} : vector<32x192xbf16>, vector<192x128xbf16>, vector<32x128xf32> -> vector<32x128xf32>
    %50 = vector.broadcast %6 : vector<1x128xf32> to vector<32x128xf32>
    %51 = arith.addf %49, %50 : vector<32x128xf32>
    %cst_24 = arith.constant 0.000000e+00 : f32
    %52 = vector.broadcast %cst_24 : f32 to vector<32x128xf32>
    %53 = arith.maximumf %51, %52 : vector<32x128xf32>
    %54 = vector.shape_cast %53 : vector<32x128xf32> to vector<2x2048xf32>
    %55 = arith.truncf %54 : vector<2x2048xf32> to vector<2x2048xbf16>
    %c0_25 = arith.constant 0 : index
    %c0_26 = arith.constant 0 : index
    %56 = vector.load %arg3[%c0_25, %c0_26] : memref<2048x32xbf16, #tpu.memory_space<vmem>>, vector<2048x32xbf16>
    %cst_27 = arith.constant dense<0.000000e+00> : vector<2x32xf32>
    %57 = tpu.matmul %55, %56, %cst_27 {dimension_numbers = #tpu.dot_dimension_numbers<[1], [0], [0], [1], [0, 0, 1, 1], [], []>} : vector<2x2048xbf16>, vector<2048x32xbf16>, vector<2x32xf32> -> vector<2x32xf32>
    %58 = vector.broadcast %7 : vector<1x32xf32> to vector<2x32xf32>
    %59 = arith.addf %57, %58 : vector<2x32xf32>
    %cst_28 = arith.constant 0.000000e+00 : f32
    %60 = vector.broadcast %cst_28 : f32 to vector<2x32xf32>
    %61 = arith.maximumf %59, %60 : vector<2x32xf32>
    %62 = arith.truncf %61 : vector<2x32xf32> to vector<2x32xbf16>
    %cst_29 = arith.constant dense<0.000000e+00> : vector<2x32xf32>
    %63 = tpu.matmul %62, %2, %cst_29 {dimension_numbers = #tpu.dot_dimension_numbers<[1], [0], [0], [1], [0, 0, 1, 1], [], []>} : vector<2x32xbf16>, vector<32x32xbf16>, vector<2x32xf32> -> vector<2x32xf32>
    %64 = vector.broadcast %8 : vector<1x32xf32> to vector<2x32xf32>
    %65 = arith.addf %63, %64 : vector<2x32xf32>
    %cst_30 = arith.constant 0.000000e+00 : f32
    %66 = vector.broadcast %cst_30 : f32 to vector<2x32xf32>
    %67 = arith.maximumf %65, %66 : vector<2x32xf32>
    %68 = arith.truncf %67 : vector<2x32xf32> to vector<2x32xbf16>
    %cst_31 = arith.constant dense<0.000000e+00> : vector<2x32xf32>
    %69 = tpu.matmul %68, %3, %cst_31 {dimension_numbers = #tpu.dot_dimension_numbers<[1], [0], [0], [1], [0, 0, 1, 1], [], []>} : vector<2x32xbf16>, vector<32x32xbf16>, vector<2x32xf32> -> vector<2x32xf32>
    %70 = vector.broadcast %9 : vector<1x32xf32> to vector<2x32xf32>
    %71 = arith.addf %69, %70 : vector<2x32xf32>
    %cst_32 = arith.constant 0.000000e+00 : f32
    %72 = vector.broadcast %cst_32 : f32 to vector<2x32xf32>
    %73 = arith.maximumf %71, %72 : vector<2x32xf32>
    %74 = arith.truncf %73 : vector<2x32xf32> to vector<2x32xbf16>
    %cst_33 = arith.constant dense<0.000000e+00> : vector<2x32xf32>
    %75 = tpu.matmul %74, %4, %cst_33 {dimension_numbers = #tpu.dot_dimension_numbers<[1], [0], [0], [1], [0, 0, 1, 1], [], []>} : vector<2x32xbf16>, vector<32x32xbf16>, vector<2x32xf32> -> vector<2x32xf32>
    %76 = vector.extract_strided_slice %75 {offsets = [0, 0], sizes = [2, 3], strides = [1, 1]} : vector<2x32xf32> to vector<2x3xf32>
    %77 = vector.broadcast %10 : vector<1x3xf32> to vector<2x3xf32>
    %78 = arith.addf %76, %77 : vector<2x3xf32>
    %c0_34 = arith.constant 0 : index
    %c0_35 = arith.constant 0 : index
    %79 = vector.load %arg6[%c0_34, %c0_35] : memref<2x3xf32, #tpu.memory_space<vmem>>, vector<2x3xf32>
    tpu.vector_store %arg6[%c0_34, %c0_35], %78 {strides = array<i32>} : memref<2x3xf32, #tpu.memory_space<vmem>>, vector<2x3xf32>,
    return
  }
  func.func @transform_0(%arg0: i32) -> (i32, i32) {
    %c0_i32 = arith.constant 0 : i32
    %c0_i32_0 = arith.constant 0 : i32
    return %arg0, %c0_i32 : i32, i32
  }
  func.func @transform_1(%arg0: i32) -> (i32, i32) {
    %c0_i32 = arith.constant 0 : i32
    %c0_i32_0 = arith.constant 0 : i32
    %c0_i32_1 = arith.constant 0 : i32
    return %c0_i32, %c0_i32_0 : i32, i32
  }
  func.func @transform_2(%arg0: i32) -> (i32, i32) {
    %c0_i32 = arith.constant 0 : i32
    %c0_i32_0 = arith.constant 0 : i32
    %c0_i32_1 = arith.constant 0 : i32
    return %c0_i32, %c0_i32_0 : i32, i32
  }
  func.func @transform_3(%arg0: i32) -> (i32, i32) {
    %c0_i32 = arith.constant 0 : i32
    %c0_i32_0 = arith.constant 0 : i32
    %c0_i32_1 = arith.constant 0 : i32
    return %c0_i32, %c0_i32_0 : i32, i32
  }
  func.func @transform_4(%arg0: i32) -> (i32, i32) {
    %c0_i32 = arith.constant 0 : i32
    %c0_i32_0 = arith.constant 0 : i32
    %c0_i32_1 = arith.constant 0 : i32
    return %c0_i32, %c0_i32_0 : i32, i32
  }
  func.func @transform_5(%arg0: i32) -> (i32, i32) {
    %c0_i32 = arith.constant 0 : i32
    %c0_i32_0 = arith.constant 0 : i32
    return %arg0, %c0_i32 : i32, i32
  }
}

</mosaic_0001>

<bundles_post_ra>
// kernel: rainbow_dqn_pallas.1
= control target key start
LH: loop header
LB: loop body
LE: loop exit
PB: predicated region body
PF: predicated region fallthrough
CT: control target
= control target key end

     0   :  { %vm93_vm0 = vcmask 1045504   ;;  %vm86_vm1 = vcmask 97280   ;;  %s3125_s0 = inlined_call_operand.vmem [shape: bf16[32,12], index: 0, kind: input, shape index: {}]   ;;  %s3126_s1 = inlined_call_operand.vmem [shape: bf16[208,128], index: 1, kind: input, shape index: {}]   ;;  %s3127_s2 = inlined_call_operand.vmem [shape: bf16[2048,32], index: 2, kind: input, shape index: {}]   ;;  %s3128_s3 = inlined_call_operand.vmem [shape: bf16[96,32], index: 3, kind: input, shape index: {}]   ;;  %s3129_s4 = inlined_call_operand.vmem [shape: f32[8,128], index: 4, kind: input, shape index: {}]   ;;  %s3130_s5 = inlined_call_operand.hbm [shape: f32[2,3], index: 5, kind: output, shape index: {}]  }
   0x1   :  { %v1774_v0 = vld [vmem:[%s3126_s1] sm:$0xf]  ;;  %v2367_v1 = vld [vmem:[%s3126_s1] sm:$0x30] }
   0x2   :  { %v1775_v2 = vor.u32 %v2367_v1, %v1774_v0  ;;  %v2386_v4 = vld [vmem:[%s3125_s0] sm:$0xff] }
   0x4   :  { %v95_v3 = vsel %vm93_vm0, %v1775_v2, 0 }
   0x5   :  { %104 = vmatpush.bf16.msra.mxu0 %v95_v3 }
   0x6   :  { %10 = vsyncpa [#allocation3], 0  ;;  %v2387_v5 = vld [vmem:[%s3125_s0 + $0x8] sm:$0xff]  ;;  %v2379_v6 = vld [vmem:[%s3126_s1 + $0x60] sm:$0xff]  ;;  %v120_v10 = vlaneseq  ;;  %vm181_vm2 = vcmask 1040384   ;;  %s2560_s14 = smov 64  }
   0x7   :  { %342 = vmatpush.bf16.msra.mxu2 %v2379_v6  ;;  %v2378_v7 = vld [vmem:[%s3126_s1 + $0x58] sm:$0xff]  ;;  %v2377_v8 = vld [vmem:[%s3126_s1 + $0x50] sm:$0xff]  ;;  %v2376_v9 = vld [vmem:[%s3126_s1 + $0x48] sm:$0xff]  ;;  %vm202_vm5 = vcmask 1046528   ;;  %vm231_vm9 = vcmask 523264   ;;  %vm1666_vm13 = vcmask 261120  }
   0x8   :  { %1776 = vmatmul.msk.bf16.vlgmr.msra.gmra.mxu0 %vm86_vm1, %v2386_v4  ;;  %v2528_v11 = vld [vmem:[%s3129_s4] ss:$0 sm:$0xff]  ;;  %v121_v12 = vshrl.u32 %v120_v10, 7  ;;  %v2374_v30 = vld [vmem:[%s3126_s1 + $0x38] sm:$0xff]  ;;  %v2373_v38 = vld [vmem:[%s3126_s1 + $0x30] sm:$0xff]  ;;  %s2561_s7 = smov [#allocation2]  }
   0x9   :  { %v2375_v26 = vld [vmem:[%s3126_s1 + $0x40] sm:$0xff]  ;;  %v2372_v48 = vld [vmem:[%s3126_s1 + $0x28] sm:$0xff]  ;;  %v2370_v62 = vld [vmem:[%s3126_s1 + $0x18] sm:$0xff]  ;;  %s1753_s8 = sshll.u32 %s2561_s7, 4  ;;  %s1755_s10 = sshll.u32 %s3130_s5, 4  ;;  %vm1746_vm14 = vcmask 17408   ;;  %s1754_s8 = int_to_ptr.vmem [resolvable:$true] %s1753_s8  ;;  %s1756_s10 = int_to_ptr.hbm [resolvable:$true] %s1755_s10 }
   0xa   :  { %v129_v15 = vand.u32 7, %v121_v12  ;;  %v122_v18 = vadd.s32 8, %v121_v12  ;;  %v123_v27 = vadd.s32 16, %v121_v12  ;;  %319 = vmatpush.bf16.msra.mxu1 %v2375_v26  ;;  %v124_v47 = vadd.s32 24, %v121_v12  ;;  %v2371_v58 = vld [vmem:[%s3126_s1 + $0x20] sm:$0xff]  ;;  %v2369_v3 = vld [vmem:[%s3126_s1 + $0x10] sm:$0xff] }
   0xb   :  { %343 = vmatpush.bf16.msra.mxu2 %v2378_v7  ;;  %v2395_v19 = vld [vmem:[%s3127_s2 + $0x38] sm:$0xff]  ;;  %v2394_v26 = vld [vmem:[%s3127_s2 + $0x30] sm:$0xff]  ;;  %v2401_v31 = vld [vmem:[%s3127_s2 + $0x68] sm:$0xff] }
   0xc   :  { %vm2619_vm3 = vcmp.eq.s32.totalorder %v129_v15, 0  ;;  %v136_v24 = vand.u32 7, %v122_v18  ;;  %v143_v34 = vand.u32 7, %v123_v27  ;;  %vm2646_vm6 = vcmp.eq.s32.totalorder %v129_v15, 7  ;;  %1443 = vmatpush.bf16.msra.mxu3 %v2395_v19  ;;  %v2402_v27 = vld [vmem:[%s3127_s2 + $0x70] sm:$0xff]  ;;  %v2415_v41 = vld [vmem:[%s3127_s2 + $0xd8] sm:$0xff] }
   0xd   :  { %v150_v57 = vand.u32 7, %v124_v47  ;;  %v2390_v42 = vld [vmem:[%s3127_s2 + $0x10] sm:$0xff]  ;;  %v2397_v47 = vld [vmem:[%s3127_s2 + $0x48] sm:$0xff]  ;;  %v2436_v19 = vld [vmem:[%s3127_s2 + $0x180] sm:$0xff] }
   0xe   :  { %vm2635_vm4 = vcmp.eq.s32.totalorder %v136_v24, 0  ;;  %320 = vmatpush.bf16.msra.mxu1 %v2374_v30  ;;  %vm2650_vm7 = vcmp.eq.s32.totalorder %v136_v24, 7  ;;  %vm2654_vm8 = vcmp.eq.s32.totalorder %v143_v34, 0  ;;  %vm200_vm11 = vcmp.eq.s32.totalorder %v143_v34, 7  ;;  %v2393_v30 = vld [vmem:[%s3127_s2 + $0x28] sm:$0xff]  ;;  %v2392_v34 = vld [vmem:[%s3127_s2 + $0x20] sm:$0xff] }
   0xf   :  { %344 = vmatpush.bf16.msra.mxu2 %v2377_v8  ;;  %vm2677_vm10 = vcmp.eq.s32.totalorder %v150_v57, 0  ;;  %vm201_vm12 = vcmp.eq.s32.totalorder %v150_v57, 7  ;;  %v2398_v43 = vld [vmem:[%s3127_s2 + $0x50] sm:$0xff]  ;;  %v2451_v57 = vld [vmem:[%s3127_s2 + $0x1f8] sm:$0xff]  ;;  %v2433_v63 = vld [vmem:[%s3127_s2 + $0x168] sm:$0xff] }
  0x10   :  { %1444 = vmatpush.bf16.msra.mxu3 %v2394_v26 }
  0x12   :  { %321 = vmatpush.bf16.msra.mxu1 %v2373_v38  ;;  %v2391_v38 = vld [vmem:[%s3127_s2 + $0x18] sm:$0xff] }
  0x13   :  { %345 = vmatpush.bf16.msra.mxu2 %v2376_v9  ;;  %v2368_v9 = vld [vmem:[%s3126_s1 + $0x8] sm:$0xff] }
  0x14   :  { %1445 = vmatpush.bf16.msra.mxu3 %v2393_v30 }
  0x16   :  { %322 = vmatpush.bf16.msra.mxu1 %v2372_v48  ;;  %v2405_v48 = vld [vmem:[%s3127_s2 + $0x88] sm:$0xff] }
  0x18   :  { %1777 = vmatmul.msk.bf16.gmra.mxu0 %vm86_vm1, %v2387_v5  ;;  %1446 = vmatpush.bf16.msra.mxu3 %v2392_v34 }
  0x1a   :  { %323 = vmatpush.bf16.msra.mxu1 %v2371_v58  ;;  %v2426_v58 = vld [vmem:[%s3127_s2 + $0x130] sm:$0xff] }
  0x1c   :  { %1447 = vmatpush.bf16.msra.mxu3 %v2391_v38 }
  0x1e   :  { %324 = vmatpush.bf16.msra.mxu1 %v2370_v62  ;;  %v2425_v62 = vld [vmem:[%s3127_s2 + $0x128] sm:$0xff] }
  0x20   :  { %1448 = vmatpush.bf16.msra.mxu3 %v2390_v42  ;;  %v2467_v42 = vld [vmem:[%s3127_s2 + $0x278] sm:$0xff] }
  0x22   :  { %325 = vmatpush.bf16.msra.mxu1 %v2369_v3  ;;  %v2432_v3 = vld [vmem:[%s3127_s2 + $0x160] sm:$0xff] }
  0x26   :  { %326 = vmatpush.bf16.msra.mxu1 %v2368_v9  ;;  %v2447_v9 = vld [vmem:[%s3127_s2 + $0x1d8] sm:$0xff] }
  0x85   :  { %v106_v13 = vpop.f32.mrf.mxu0 }
  0x86   :  { %v107_v14 = vadd.f32 %v2528_v11, %v106_v13 }
  0x88   :  { %v116_v16 = vmax.f32 %v107_v14, 0.0 }
  0x8a   :  { %v182_v17 = vrot.slane %v116_v16, 7  ;;  %v203_v39 = vrot.slane %v116_v16, 1 }
  0x8c   :  { %v2624_v20 = vsel %vm181_vm2, 0.0, %v182_v17 }
  0x8d   :  { %v108_v21 = vpop.f32.mrf.mxu0  ;;  %v194_v22 = vsel %vm2619_vm3, 0.0, %v2624_v20  ;;  %v2403_v20 = vld [vmem:[%s3127_s2 + $0x78] sm:$0xff] }
  0x8e   :  { %v109_v23 = vadd.f32 %v2528_v11, %v108_v21  ;;  %1456 = vmatpush.bf16.msrb.mxu0 %v2403_v20  ;;  %v2444_v20 = vld [vmem:[%s3127_s2 + $0x1c0] sm:$0xff] }
  0x90   :  { %v117_v25 = vmax.f32 %v109_v23, 0.0 }
  0x92   :  { %v183_v28 = vrot.slane %v117_v25, 7  ;;  %v2518_v29 = vpack.i.bf16 %v117_v25, %v116_v16  ;;  %v204_v36 = vrot.slane %v117_v25, 1  ;;  %v2419_v25 = vld [vmem:[%s3127_s2 + $0xf8] sm:$0xff]  ;;  %1457 = vmatpush.bf16.msrb.mxu0 %v2402_v27 }
  0x93   :  { %1482 = vmatpush.bf16.msrb.mxu1 %v2419_v25 }
  0x94   :  { %2519 = vrot.lane.b32.xlu0 %v2518_v29, %s2560_s14  ;;  %v184_v32 = vsel %vm181_vm2, %v182_v17, %v183_v28  ;;  %v205_v46 = vsel %vm202_vm5, %v203_v39, %v204_v36  ;;  %v2418_v29 = vld [vmem:[%s3127_s2 + $0xf0] sm:$0xff]  ;;  %v2399_v39 = vld [vmem:[%s3127_s2 + $0x58] sm:$0xff] }
  0x95   :  { %v111_v33 = vpop.f32.mrf.mxu0  ;;  %v195_v35 = vsel %vm2635_vm4, 0.0, %v184_v32  ;;  %v215_v52 = vsel %vm2646_vm6, 0.0, %v205_v46  ;;  %v2409_v32 = vld [vmem:[%s3127_s2 + $0xa8] sm:$0xff] }
  0x96   :  { %v112_v37 = vadd.f32 %v2528_v11, %v111_v33  ;;  %v2417_v33 = vld [vmem:[%s3127_s2 + $0xe8] sm:$0xff]  ;;  %1458 = vmatpush.bf16.msrb.mxu0 %v2401_v31 }
  0x97   :  { %1483 = vmatpush.bf16.msrb.mxu1 %v2418_v29  ;;  %v2389_v46 = vld [vmem:[%s3127_s2 + $0x8] sm:$0xff] }
  0x98   :  { %v118_v40 = vmax.f32 %v112_v37, 0.0  ;;  %v2416_v37 = vld [vmem:[%s3127_s2 + $0xe0] sm:$0xff]  ;;  %1449 = vmatpush.bf16.msra.mxu3 %v2389_v46 }
  0x9a   :  { %v185_v44 = vrot.slane %v118_v40, 7  ;;  %v206_v45 = vrot.slane %v118_v40, 1 }
  0x9b   :  { %1484 = vmatpush.bf16.msrb.mxu1 %v2417_v33 }
  0x9c   :  { %v207_v49 = vsel %vm202_vm5, %v204_v36, %v206_v45  ;;  %v186_v50 = vsel %vm181_vm2, %v183_v28, %v185_v44  ;;  %v2410_v28 = vld [vmem:[%s3127_s2 + $0xb0] sm:$0xff]  ;;  %v2408_v36 = vld [vmem:[%s3127_s2 + $0xa0] sm:$0xff] }
  0x9d   :  { %v113_v51 = vpop.f32.mrf.mxu0  ;;  %v216_v53 = vsel %vm2650_vm7, 0.0, %v207_v49  ;;  %v196_v54 = vsel %vm2654_vm8, 0.0, %v186_v50  ;;  %v2413_v49 = vld [vmem:[%s3127_s2 + $0xc8] sm:$0xff]  ;;  %v2388_v50 = vld [vmem:[%s3127_s2] sm:$0xff] }
  0x9e   :  { %v114_v55 = vadd.f32 %v2528_v11, %v113_v51  ;;  %v237_v56 = vpack.c.bf16 %v216_v53, %v215_v52  ;;  %v2396_v51 = vld [vmem:[%s3127_s2 + $0x40] sm:$0xff]  ;;  %1450 = vmatpush.bf16.msra.mxu3 %v2388_v50 }
  0x9f   :  { %1485 = vmatpush.bf16.msrb.mxu1 %v2416_v37  ;;  %v2404_v52 = vld [vmem:[%s3127_s2 + $0x80] sm:$0xff] }
  0xa0   :  { %v119_v59 = vmax.f32 %v114_v55, 0.0  ;;  %1826 = vmatmul.msk.bf16.vlgmr.msra.gmra.mxu2 %vm231_vm9, %v237_v56  ;;  %v2412_v53 = vld [vmem:[%s3127_s2 + $0xc0] sm:$0xff]  ;;  %v2435_v55 = vld [vmem:[%s3127_s2 + $0x178] sm:$0xff] }
  0xa1   :  { %v2443_v56 = vld [vmem:[%s3127_s2 + $0x1b8] sm:$0xff] }
  0xa2   :  { %v187_v60 = vrot.slane %v119_v59, 7  ;;  %v2523_v61 = vpack.i.bf16 %v119_v59, %v118_v40  ;;  %v208_v0 = vrot.slane %v119_v59, 1  ;;  %v2407_v40 = vld [vmem:[%s3127_s2 + $0x98] sm:$0xff]  ;;  %v2434_v59 = vld [vmem:[%s3127_s2 + $0x170] sm:$0xff] }
  0xa3   :  { %1486 = vmatpush.bf16.msrb.mxu1 %v2415_v41  ;;  %v2459_v41 = vld [vmem:[%s3127_s2 + $0x238] sm:$0xff] }
  0xa4   :  { %2524 = vrot.lane.b32.xlu0 %v2523_v61, %s2560_s14  ;;  %v188_v1 = vsel %vm181_vm2, %v185_v44, %v187_v60  ;;  %v209_v4 = vsel %vm202_vm5, %v206_v45, %v208_v0  ;;  %v214_v5 = vsel %vm202_vm5, %v208_v0, 0.0  ;;  %v2406_v44 = vld [vmem:[%s3127_s2 + $0x90] sm:$0xff]  ;;  %v2441_v0 = vld [vmem:[%s3127_s2 + $0x1a8] sm:$0xff] }
  0xa5   :  { %v197_v2 = vsel %vm2677_vm10, 0.0, %v188_v1  ;;  %v217_v6 = vsel %vm200_vm11, 0.0, %v209_v4  ;;  %v218_v7 = vsel %vm201_vm12, 0.0, %v214_v5  ;;  %v2414_v45 = vld [vmem:[%s3127_s2 + $0xd0] sm:$0xff]  ;;  %v2449_v1 = vld [vmem:[%s3127_s2 + $0x1e8] sm:$0xff]  ;;  %v2440_v4 = vld [vmem:[%s3127_s2 + $0x1a0] sm:$0xff] }
  0xa6   :  { %v239_v8 = vpack.c.bf16 %v218_v7, %v217_v6  ;;  %v2442_v60 = vld [vmem:[%s3127_s2 + $0x1b0] sm:$0xff]  ;;  %v2448_v5 = vld [vmem:[%s3127_s2 + $0x1e0] sm:$0xff]  ;;  %v2423_v6 = vld [vmem:[%s3127_s2 + $0x118] sm:$0xff] }
  0xa7   :  { %1487 = vmatpush.bf16.msrb.mxu1 %v2414_v45  ;;  %v2450_v61 = vld [vmem:[%s3127_s2 + $0x1f0] sm:$0xff]  ;;  %v2431_v7 = vld [vmem:[%s3127_s2 + $0x158] sm:$0xff] }
  0xab   :  { %1488 = vmatpush.bf16.msrb.mxu1 %v2413_v49 }
  0xaf   :  { %1489 = vmatpush.bf16.msrb.mxu1 %v2412_v53 }
  0xb0   :  { %1827 = vmatmul.msk.bf16.gmra.mxu2 %vm231_vm9, %v239_v8  ;;  %v2439_v8 = vld [vmem:[%s3127_s2 + $0x198] sm:$0xff] }
 0x106   :  { %v2520_v10 = vpop.permute.xlu0 %2519 }
 0x107   :  { %v2522_v11 = vunpack.i.h.bf16 %v2520_v10  ;;  %v2521_v12 = vunpack.i.l.bf16 %v2520_v10  ;;  %v2422_v10 = vld [vmem:[%s3127_s2 + $0x110] sm:$0xff] }
 0x109   :  { %v232_v13 = vsel %vm231_vm9, %v194_v22, %v2521_v12  ;;  %v233_v14 = vsel %vm231_vm9, %v195_v35, %v2522_v11  ;;  %v2411_v22 = vld [vmem:[%s3127_s2 + $0xb8] sm:$0xff]  ;;  %v2400_v35 = vld [vmem:[%s3127_s2 + $0x60] sm:$0xff]  ;;  %v2430_v11 = vld [vmem:[%s3127_s2 + $0x150] sm:$0xff] }
 0x10a   :  { %v236_v15 = vpack.c.bf16 %v233_v14, %v232_v13  ;;  %1469 = vmatpush.bf16.msrb.mxu2 %v2411_v22  ;;  %1459 = vmatpush.bf16.msrb.mxu0 %v2400_v35  ;;  %v2438_v12 = vld [vmem:[%s3127_s2 + $0x190] sm:$0xff]  ;;  %v2421_v14 = vld [vmem:[%s3127_s2 + $0x108] sm:$0xff] }
 0x10b   :  { %v2446_v13 = vld [vmem:[%s3127_s2 + $0x1d0] sm:$0xff] }
 0x10c   :  { %327 = vmatmul.bf16.vlgmr.msra.gmra.mxu1 %v236_v15  ;;  %v2429_v15 = vld [vmem:[%s3127_s2 + $0x148] sm:$0xff] }
 0x10d   :  { %1534 = vmatpush.bf16.msra.mxu1 %v2451_v57 }
 0x10e   :  { %1470 = vmatpush.bf16.msrb.mxu2 %v2410_v28  ;;  %1460 = vmatpush.bf16.msrb.mxu0 %v2399_v39 }
 0x111   :  { %1535 = vmatpush.bf16.msra.mxu1 %v2450_v61  ;;  %v2474_v61 = vld [vmem:[%s3127_s2 + $0x2b0] sm:$0xff] }
 0x112   :  { %1471 = vmatpush.bf16.msrb.mxu2 %v2409_v32  ;;  %1461 = vmatpush.bf16.msrb.mxu0 %v2398_v43 }
 0x115   :  { %1536 = vmatpush.bf16.msra.mxu1 %v2449_v1  ;;  %v2473_v1 = vld [vmem:[%s3127_s2 + $0x2a8] sm:$0xff] }
 0x116   :  { %v2525_v16 = vpop.permute.xlu0 %2524  ;;  %1472 = vmatpush.bf16.msrb.mxu2 %v2408_v36  ;;  %1462 = vmatpush.bf16.msrb.mxu0 %v2397_v47  ;;  %v2475_v47 = vld [vmem:[%s3127_s2 + $0x2b8] sm:$0xff] }
 0x117   :  { %v2527_v17 = vunpack.i.h.bf16 %v2525_v16  ;;  %v2526_v18 = vunpack.i.l.bf16 %v2525_v16  ;;  %v2437_v16 = vld [vmem:[%s3127_s2 + $0x188] sm:$0xff] }
 0x119   :  { %v234_v21 = vsel %vm231_vm9, %v196_v54, %v2526_v18  ;;  %v235_v23 = vsel %vm231_vm9, %v197_v2, %v2527_v17  ;;  %v2427_v54 = vld [vmem:[%s3127_s2 + $0x138] sm:$0xff]  ;;  %v2424_v2 = vld [vmem:[%s3127_s2 + $0x120] sm:$0xff]  ;;  %1537 = vmatpush.bf16.msra.mxu1 %v2448_v5  ;;  %v2445_v17 = vld [vmem:[%s3127_s2 + $0x1c8] sm:$0xff] }
 0x11a   :  { %v238_v24 = vpack.c.bf16 %v235_v23, %v234_v21  ;;  %1473 = vmatpush.bf16.msrb.mxu2 %v2407_v40  ;;  %1463 = vmatpush.bf16.msrb.mxu0 %v2396_v51  ;;  %v2529_v21 = vld [vmem:[%s3129_s4 + $0x1] ss:$0 sm:$0xff] }
 0x11b   :  { %1495 = vmatpush.bf16.msrb.mxu3 %v2427_v54  ;;  %v2420_v23 = vld [vmem:[%s3127_s2 + $0x100] sm:$0xff] }
 0x11c   :  { %332 = vmatmul.bf16.gmra.mxu1 %v238_v24  ;;  %v2428_v24 = vld [vmem:[%s3127_s2 + $0x140] sm:$0xff] }
 0x11d   :  { %1538 = vmatpush.bf16.msra.mxu1 %v2447_v9  ;;  %v2472_v5 = vld [vmem:[%s3127_s2 + $0x2a0] sm:$0xff]  ;;  %v2455_v9 = vld [vmem:[%s3127_s2 + $0x218] sm:$0xff] }
 0x11e   :  { %1474 = vmatpush.bf16.msrb.mxu2 %v2406_v44  ;;  %1508 = vmatpush.bf16.msra.mxu0 %v2435_v55 }
 0x11f   :  { %1496 = vmatpush.bf16.msrb.mxu3 %v2426_v58 }
 0x121   :  { %1539 = vmatpush.bf16.msra.mxu1 %v2446_v13  ;;  %v2471_v13 = vld [vmem:[%s3127_s2 + $0x298] sm:$0xff] }
 0x122   :  { %1475 = vmatpush.bf16.msrb.mxu2 %v2405_v48  ;;  %1509 = vmatpush.bf16.msra.mxu0 %v2434_v59  ;;  %v2458_v59 = vld [vmem:[%s3127_s2 + $0x230] sm:$0xff] }
 0x123   :  { %1497 = vmatpush.bf16.msrb.mxu3 %v2425_v62  ;;  %v347_v18 = vpop.f32.mrf.mxu2  ;;  %v2482_v62 = vld [vmem:[%s3127_s2 + $0x2f0] sm:$0xff] }
 0x125   :  { %1540 = vmatpush.bf16.msra.mxu1 %v2445_v17  ;;  %v2470_v17 = vld [vmem:[%s3127_s2 + $0x290] sm:$0xff] }
 0x126   :  { %1476 = vmatpush.bf16.msrb.mxu2 %v2404_v52  ;;  %1510 = vmatpush.bf16.msra.mxu0 %v2433_v63  ;;  %v2457_v63 = vld [vmem:[%s3127_s2 + $0x228] sm:$0xff] }
 0x127   :  { %1498 = vmatpush.bf16.msrb.mxu3 %v2424_v2  ;;  %v2481_v2 = vld [vmem:[%s3127_s2 + $0x2e8] sm:$0xff] }
 0x129   :  { %1541 = vmatpush.bf16.msra.mxu1 %v2444_v20  ;;  %v2452_v20 = vld [vmem:[%s3127_s2 + $0x200] sm:$0xff] }
 0x12a   :  { %1521 = vmatpush.bf16.msra.mxu2 %v2443_v56  ;;  %1511 = vmatpush.bf16.msra.mxu0 %v2432_v3  ;;  %v2483_v56 = vld [vmem:[%s3127_s2 + $0x2f8] sm:$0xff]  ;;  %v2456_v3 = vld [vmem:[%s3127_s2 + $0x220] sm:$0xff] }
 0x12b   :  { %1499 = vmatpush.bf16.msrb.mxu3 %v2423_v6  ;;  %v349_v28 = vpop.f32.mrf.mxu2  ;;  %v2480_v6 = vld [vmem:[%s3127_s2 + $0x2e0] sm:$0xff] }
 0x12e   :  { %1522 = vmatpush.bf16.msra.mxu2 %v2442_v60  ;;  %1512 = vmatpush.bf16.msra.mxu0 %v2431_v7  ;;  %v2466_v60 = vld [vmem:[%s3127_s2 + $0x270] sm:$0xff] }
 0x12f   :  { %1500 = vmatpush.bf16.msrb.mxu3 %v2422_v10  ;;  %v2463_v10 = vld [vmem:[%s3127_s2 + $0x258] sm:$0xff] }
 0x132   :  { %1523 = vmatpush.bf16.msra.mxu2 %v2441_v0  ;;  %1513 = vmatpush.bf16.msra.mxu0 %v2430_v11  ;;  %v2465_v0 = vld [vmem:[%s3127_s2 + $0x268] sm:$0xff] }
 0x133   :  { %1501 = vmatpush.bf16.msrb.mxu3 %v2421_v14  ;;  %v352_v30 = vpop.f32.mrf.mxu2  ;;  %v2479_v14 = vld [vmem:[%s3127_s2 + $0x2d8] sm:$0xff] }
 0x136   :  { %1524 = vmatpush.bf16.msra.mxu2 %v2440_v4  ;;  %1514 = vmatpush.bf16.msra.mxu0 %v2429_v15  ;;  %v2464_v4 = vld [vmem:[%s3127_s2 + $0x260] sm:$0xff]  ;;  %v2454_v15 = vld [vmem:[%s3127_s2 + $0x210] sm:$0xff] }
 0x137   :  { %1502 = vmatpush.bf16.msrb.mxu3 %v2420_v23  ;;  %v2461_v23 = vld [vmem:[%s3127_s2 + $0x248] sm:$0xff] }
 0x13a   :  { %1525 = vmatpush.bf16.msra.mxu2 %v2439_v8  ;;  %1515 = vmatpush.bf16.msra.mxu0 %v2428_v24  ;;  %v2469_v24 = vld [vmem:[%s3127_s2 + $0x288] sm:$0xff] }
 0x13b   :  { %v354_v38 = vpop.f32.mrf.mxu2 }
 0x13e   :  { %1526 = vmatpush.bf16.msra.mxu2 %v2438_v12 }
 0x142   :  { %1527 = vmatpush.bf16.msra.mxu2 %v2437_v16  ;;  %v2462_v16 = vld [vmem:[%s3127_s2 + $0x250] sm:$0xff] }
 0x146   :  { %1528 = vmatpush.bf16.msra.mxu2 %v2436_v19  ;;  %v2477_v19 = vld [vmem:[%s3127_s2 + $0x2c8] sm:$0xff] }
 0x189   :  { %v328_v22 = vpop.f32.mrf.mxu1 }
 0x18a   :  { %v329_v25 = vadd.f32 %v2529_v21, %v328_v22  ;;  %v2460_v22 = vld [vmem:[%s3127_s2 + $0x240] sm:$0xff] }
 0x18c   :  { %v348_v26 = vadd.f32 %v347_v18, %v329_v25  ;;  %v2478_v18 = vld [vmem:[%s3127_s2 + $0x2d0] sm:$0xff]  ;;  %v2468_v25 = vld [vmem:[%s3127_s2 + $0x280] sm:$0xff] }
 0x18e   :  { %v357_v27 = vmax.f32 %v348_v26, 0.0  ;;  %v2476_v26 = vld [vmem:[%s3127_s2 + $0x2c0] sm:$0xff] }
 0x190   :  { %365 = vst [vmem:[#allocation1] ss:$9 sm:$0xff] %v357_v27  ;;  %v2491_v27 = vld [vmem:[%s3127_s2 + $0x338] sm:$0xff] }
 0x191   :  { %v330_v29 = vpop.f32.mrf.mxu1 }
 0x192   :  { %v331_v35 = vadd.f32 %v2529_v21, %v330_v29  ;;  %v2507_v29 = vld [vmem:[%s3127_s2 + $0x3b8] sm:$0xff] }
 0x194   :  { %v350_v39 = vadd.f32 %v349_v28, %v331_v35  ;;  %v2499_v28 = vld [vmem:[%s3127_s2 + $0x378] sm:$0xff] }
 0x196   :  { %v358_v48 = vmax.f32 %v350_v39, 0.0 }
 0x199   :  { %v333_v31 = vpop.f32.mrf.mxu1 }
 0x19a   :  { %v334_v32 = vadd.f32 %v2529_v21, %v333_v31 }
 0x19c   :  { %v353_v33 = vadd.f32 %v352_v30, %v334_v32  ;;  %v2515_v30 = vld [vmem:[%s3127_s2 + $0x3f8] sm:$0xff] }
 0x19e   :  { %v359_v34 = vmax.f32 %v353_v33, 0.0 }
 0x1a0   :  { %367 = vst [vmem:[#allocation1 + $0x1] ss:$9 sm:$0xff] %v359_v34 }
 0x1a1   :  { %v335_v36 = vpop.f32.mrf.mxu1 }
 0x1a2   :  { %v336_v37 = vadd.f32 %v2529_v21, %v335_v36  ;;  %v2453_v21 = vld [vmem:[%s3127_s2 + $0x208] sm:$0xff] }
 0x1a4   :  { %v355_v40 = vadd.f32 %v354_v38, %v336_v37  ;;  %v2490_v37 = vld [vmem:[%s3127_s2 + $0x330] sm:$0xff] }
 0x1a5   :  { %v2498_v38 = vld [vmem:[%s3127_s2 + $0x370] sm:$0xff] }
 0x1a6   :  { %v360_v43 = vmax.f32 %v355_v40, 0.0 }
 0x1a7   :  { %v368_v44 = vld [vmem:[#allocation1] sm:$0xff]  ;;  %v369_v45 = vld [vmem:[#allocation1 + $0x9] sm:$0xff]  ;;  %v370_v46 = vld [vmem:[#allocation1 + $0x12] sm:$0xff] }
 0x1a8   :  { %v402_v49 = vpack.c.bf16 %v368_v44, %v368_v44  ;;  %v403_v50 = vpack.c.bf16 %v369_v45, %v369_v45  ;;  %v404_v51 = vpack.c.bf16 %v370_v46, %v370_v46  ;;  %v371_v52 = vld [vmem:[#allocation1 + $0x1b] sm:$0xff]  ;;  %v372_v53 = vld [vmem:[#allocation1 + $0x24] sm:$0xff]  ;;  %v373_v54 = vld [vmem:[#allocation1 + $0x2d] sm:$0xff] }
 0x1a9   :  { %v405_v55 = vpack.c.bf16 %v371_v52, %v371_v52  ;;  %v374_v57 = vld [vmem:[#allocation1 + $0x36] sm:$0xff]  ;;  %v375_v58 = vld [vmem:[#allocation1 + $0x3f] sm:$0xff]  ;;  %v406_v7 = vpack.c.bf16 %v372_v53, %v372_v53  ;;  %v407_v8 = vpack.c.bf16 %v373_v54, %v373_v54  ;;  %v2497_v44 = vld [vmem:[%s3127_s2 + $0x368] sm:$0xff] }
 0x1aa   :  { %1451 = vmatmul.bf16.vlgmr.msra.gmra.mxu3 %v402_v49  ;;  %1464 = vmatmul.bf16.vlgmr.msrb.gmra.mxu0 %v403_v50  ;;  %376 = vst [vmem:[#allocation1] ss:$9 sm:$0xff] %v358_v48  ;;  %v408_v11 = vpack.c.bf16 %v374_v57, %v374_v57  ;;  %v409_v12 = vpack.c.bf16 %v375_v58, %v375_v58  ;;  %v2505_v45 = vld [vmem:[%s3127_s2 + $0x3a8] sm:$0xff]  ;;  %v2496_v48 = vld [vmem:[%s3127_s2 + $0x360] sm:$0xff]  ;;  %v2495_v52 = vld [vmem:[%s3127_s2 + $0x358] sm:$0xff] }
 0x1ab   :  { %1477 = vmatmul.bf16.vlgmr.msrb.gmra.mxu2 %v404_v51  ;;  %1490 = vmatmul.bf16.vlgmr.msrb.gmra.mxu1 %v405_v55  ;;  %377 = vst [vmem:[#allocation1 + $0x1] ss:$9 sm:$0xff] %v360_v43  ;;  %v2489_v43 = vld [vmem:[%s3127_s2 + $0x328] sm:$0xff]  ;;  %v2504_v49 = vld [vmem:[%s3127_s2 + $0x3a0] sm:$0xff]  ;;  %v2487_v51 = vld [vmem:[%s3127_s2 + $0x318] sm:$0xff] }
 0x1ac   :  { %1547 = vmatpush.bf16.msra.mxu3 %v2459_v41  ;;  %1560 = vmatpush.bf16.msrb.mxu0 %v2467_v42  ;;  %v2506_v41 = vld [vmem:[%s3127_s2 + $0x3b0] sm:$0xff]  ;;  %v2513_v46 = vld [vmem:[%s3127_s2 + $0x3e8] sm:$0xff]  ;;  %v2512_v50 = vld [vmem:[%s3127_s2 + $0x3e0] sm:$0xff] }
 0x1ad   :  { %1573 = vmatpush.bf16.msrb.mxu2 %v2475_v47  ;;  %1586 = vmatpush.bf16.msrb.mxu1 %v2483_v56  ;;  %v2514_v42 = vld [vmem:[%s3127_s2 + $0x3f0] sm:$0xff]  ;;  %v2488_v47 = vld [vmem:[%s3127_s2 + $0x320] sm:$0xff]  ;;  %v2503_v53 = vld [vmem:[%s3127_s2 + $0x398] sm:$0xff] }
 0x1ae   :  { %v2511_v54 = vld [vmem:[%s3127_s2 + $0x3d8] sm:$0xff]  ;;  %v2486_v55 = vld [vmem:[%s3127_s2 + $0x310] sm:$0xff] }
 0x1af   :  { %v2494_v56 = vld [vmem:[%s3127_s2 + $0x350] sm:$0xff] }
 0x1b0   :  { %1548 = vmatpush.bf16.msra.mxu3 %v2458_v59  ;;  %1561 = vmatpush.bf16.msrb.mxu0 %v2466_v60  ;;  %v2502_v57 = vld [vmem:[%s3127_s2 + $0x390] sm:$0xff]  ;;  %v2485_v59 = vld [vmem:[%s3127_s2 + $0x308] sm:$0xff] }
 0x1b1   :  { %1574 = vmatpush.bf16.msrb.mxu2 %v2474_v61  ;;  %1587 = vmatpush.bf16.msrb.mxu1 %v2482_v62  ;;  %v2510_v58 = vld [vmem:[%s3127_s2 + $0x3d0] sm:$0xff]  ;;  %v2493_v60 = vld [vmem:[%s3127_s2 + $0x348] sm:$0xff] }
 0x1b2   :  { %v378_v31 = vld [vmem:[#allocation1] sm:$0xff]  ;;  %v379_v32 = vld [vmem:[#allocation1 + $0x9] sm:$0xff]  ;;  %v380_v33 = vld [vmem:[#allocation1 + $0x12] sm:$0xff] }
 0x1b3   :  { %v381_v34 = vld [vmem:[#allocation1 + $0x1b] sm:$0xff]  ;;  %v410_v35 = vpack.c.bf16 %v378_v31, %v378_v31  ;;  %v411_v36 = vpack.c.bf16 %v379_v32, %v379_v32  ;;  %v412_v39 = vpack.c.bf16 %v380_v33, %v380_v33  ;;  %v2501_v61 = vld [vmem:[%s3127_s2 + $0x388] sm:$0xff] }
 0x1b4   :  { %1549 = vmatpush.bf16.msra.mxu3 %v2457_v63  ;;  %1562 = vmatpush.bf16.msrb.mxu0 %v2465_v0  ;;  %v413_v40 = vpack.c.bf16 %v381_v34, %v381_v34  ;;  %v2509_v62 = vld [vmem:[%s3127_s2 + $0x3c8] sm:$0xff]  ;;  %v2484_v63 = vld [vmem:[%s3127_s2 + $0x300] sm:$0xff] }
 0x1b5   :  { %1575 = vmatpush.bf16.msrb.mxu2 %v2473_v1  ;;  %1588 = vmatpush.bf16.msrb.mxu1 %v2481_v2  ;;  %v2492_v0 = vld [vmem:[%s3127_s2 + $0x340] sm:$0xff] }
 0x1b6   :  { %v2500_v1 = vld [vmem:[%s3127_s2 + $0x380] sm:$0xff] }
 0x1b7   :  { %v2508_v2 = vld [vmem:[%s3127_s2 + $0x3c0] sm:$0xff] }
 0x1b8   :  { %1550 = vmatpush.bf16.msra.mxu3 %v2456_v3  ;;  %1563 = vmatpush.bf16.msrb.mxu0 %v2464_v4  ;;  %v382_v3 = vld [vmem:[#allocation1 + $0x24] sm:$0xff]  ;;  %v383_v4 = vld [vmem:[#allocation1 + $0x2d] sm:$0xff] }
 0x1b9   :  { %1576 = vmatpush.bf16.msrb.mxu2 %v2472_v5  ;;  %1589 = vmatpush.bf16.msrb.mxu1 %v2480_v6  ;;  %v384_v5 = vld [vmem:[#allocation1 + $0x36] sm:$0xff]  ;;  %v385_v6 = vld [vmem:[#allocation1 + $0x3f] sm:$0xff] }
 0x1ba   :  { %1503 = vmatmul.bf16.vlgmr.msrb.gmra.mxu3 %v406_v7  ;;  %1516 = vmatmul.bf16.vlgmr.msra.gmra.mxu0 %v407_v8  ;;  %v414_v7 = vpack.c.bf16 %v382_v3, %v382_v3  ;;  %v415_v8 = vpack.c.bf16 %v383_v4, %v383_v4  ;;  %v2384_v3 = vld [vmem:[%s3128_s3 + $0x20] sm:$0xff] }
 0x1bb   :  { %1529 = vmatmul.bf16.vlgmr.msra.gmra.mxu2 %v408_v11  ;;  %1542 = vmatmul.bf16.vlgmr.msra.gmra.mxu1 %v409_v12  ;;  %v2531_v4 = vld [vmem:[%s3129_s4 + $0x3] ss:$0 sm:$0xff] }
 0x1bc   :  { %1551 = vmatpush.bf16.msra.mxu3 %v2455_v9  ;;  %1564 = vmatpush.bf16.msrb.mxu0 %v2463_v10  ;;  %v416_v9 = vpack.c.bf16 %v384_v5, %v384_v5  ;;  %v417_v10 = vpack.c.bf16 %v385_v6, %v385_v6 }
 0x1bd   :  { %1577 = vmatpush.bf16.msrb.mxu2 %v2471_v13  ;;  %1590 = vmatpush.bf16.msrb.mxu1 %v2479_v14 }
 0x1c0   :  { %1552 = vmatpush.bf16.msra.mxu3 %v2454_v15  ;;  %1565 = vmatpush.bf16.msrb.mxu0 %v2462_v16 }
 0x1c1   :  { %1578 = vmatpush.bf16.msrb.mxu2 %v2470_v17  ;;  %1591 = vmatpush.bf16.msrb.mxu1 %v2478_v18 }
 0x1c4   :  { %1553 = vmatpush.bf16.msra.mxu3 %v2453_v21  ;;  %1566 = vmatpush.bf16.msrb.mxu0 %v2461_v23 }
 0x1c5   :  { %1579 = vmatpush.bf16.msrb.mxu2 %v2469_v24  ;;  %1592 = vmatpush.bf16.msrb.mxu1 %v2477_v19 }
 0x1c8   :  { %1554 = vmatpush.bf16.msra.mxu3 %v2452_v20  ;;  %1567 = vmatpush.bf16.msrb.mxu0 %v2460_v22  ;;  %v2530_v20 = vld [vmem:[%s3129_s4 + $0x2] ss:$0 sm:$0xff] }
 0x1c9   :  { %1580 = vmatpush.bf16.msrb.mxu2 %v2468_v25  ;;  %1593 = vmatpush.bf16.msrb.mxu1 %v2476_v26 }
 0x1cb   :  { %1555 = vmatmul.bf16.vlgmr.msra.gmra.mxu3 %v410_v35  ;;  %1568 = vmatmul.bf16.vlgmr.msrb.gmra.mxu0 %v411_v36 }
 0x1cc   :  { %1599 = vmatpush.bf16.msrb.mxu3 %v2491_v27  ;;  %1612 = vmatpush.bf16.msra.mxu0 %v2499_v28 }
 0x1cd   :  { %1625 = vmatpush.bf16.msra.mxu2 %v2507_v29  ;;  %1638 = vmatpush.bf16.msra.mxu1 %v2515_v30  ;;  %v2381_v30 = vld [vmem:[%s3128_s3 + $0x8] sm:$0xff] }
 0x1ce   :  { %1581 = vmatmul.bf16.vlgmr.msrb.gmra.mxu2 %v412_v39  ;;  %1594 = vmatmul.bf16.vlgmr.msrb.gmra.mxu1 %v413_v40 }
 0x1d0   :  { %1600 = vmatpush.bf16.msrb.mxu3 %v2490_v37  ;;  %1613 = vmatpush.bf16.msra.mxu0 %v2498_v38 }
 0x1d1   :  { %1626 = vmatpush.bf16.msra.mxu2 %v2506_v41  ;;  %1639 = vmatpush.bf16.msra.mxu1 %v2514_v42  ;;  %v2380_v41 = vld [vmem:[%s3128_s3] sm:$0xff] }
 0x1d4   :  { %1601 = vmatpush.bf16.msrb.mxu3 %v2489_v43  ;;  %1614 = vmatpush.bf16.msra.mxu0 %v2497_v44 }
 0x1d5   :  { %1627 = vmatpush.bf16.msra.mxu2 %v2505_v45  ;;  %1640 = vmatpush.bf16.msra.mxu1 %v2513_v46  ;;  %v2383_v45 = vld [vmem:[%s3128_s3 + $0x18] sm:$0xff]  ;;  %v2382_v46 = vld [vmem:[%s3128_s3 + $0x10] sm:$0xff] }
 0x1d8   :  { %1602 = vmatpush.bf16.msrb.mxu3 %v2488_v47  ;;  %1615 = vmatpush.bf16.msra.mxu0 %v2496_v48 }
 0x1d9   :  { %1628 = vmatpush.bf16.msra.mxu2 %v2504_v49  ;;  %1641 = vmatpush.bf16.msra.mxu1 %v2512_v50 }
 0x1dc   :  { %1603 = vmatpush.bf16.msrb.mxu3 %v2487_v51  ;;  %1616 = vmatpush.bf16.msra.mxu0 %v2495_v52 }
 0x1dd   :  { %1629 = vmatpush.bf16.msra.mxu2 %v2503_v53  ;;  %1642 = vmatpush.bf16.msra.mxu1 %v2511_v54 }
 0x1e0   :  { %1604 = vmatpush.bf16.msrb.mxu3 %v2486_v55  ;;  %1617 = vmatpush.bf16.msra.mxu0 %v2494_v56 }
 0x1e1   :  { %1630 = vmatpush.bf16.msra.mxu2 %v2502_v57  ;;  %1643 = vmatpush.bf16.msra.mxu1 %v2510_v58 }
 0x1e4   :  { %1605 = vmatpush.bf16.msrb.mxu3 %v2485_v59  ;;  %1618 = vmatpush.bf16.msra.mxu0 %v2493_v60 }
 0x1e5   :  { %1631 = vmatpush.bf16.msra.mxu2 %v2501_v61  ;;  %1644 = vmatpush.bf16.msra.mxu1 %v2509_v62 }
 0x1e8   :  { %1606 = vmatpush.bf16.msrb.mxu3 %v2484_v63  ;;  %1619 = vmatpush.bf16.msra.mxu0 %v2492_v0 }
 0x1e9   :  { %1632 = vmatpush.bf16.msra.mxu2 %v2500_v1  ;;  %1645 = vmatpush.bf16.msra.mxu1 %v2508_v2  ;;  %v2385_v2 = vld [vmem:[%s3128_s3 + $0x28] sm:$0xff] }
 0x1eb   :  { %1607 = vmatmul.bf16.vlgmr.msrb.gmra.mxu3 %v414_v7  ;;  %1620 = vmatmul.bf16.vlgmr.msra.gmra.mxu0 %v415_v8 }
 0x1ec   :  { %1633 = vmatmul.bf16.vlgmr.msra.gmra.mxu2 %v416_v9  ;;  %1646 = vmatmul.bf16.vlgmr.msra.gmra.mxu1 %v417_v10  ;;  %v2532_v10 = vld [vmem:[%s3129_s4 + $0x4] ss:$0 sm:$0xff] }
 0x1ed   :  { %1676 = vmatpush.bf16.msra.mxu3 %v2381_v30  ;;  %1707 = vmatpush.bf16.msrb.mxu0 %v2383_v45 }
 0x1ee   :  { %1737 = vmatpush.bf16.msrb.mxu2 %v2385_v2 }
 0x1f1   :  { %1677 = vmatpush.bf16.msra.mxu3 %v2380_v41  ;;  %1708 = vmatpush.bf16.msrb.mxu0 %v2382_v46 }
 0x1f2   :  { %1738 = vmatpush.bf16.msrb.mxu2 %v2384_v3 }
 0x227   :  { %v1465_v11 = vpop.f32.mrf.mxu0 }
 0x228   :  { %v1491_v12 = vpop.f32.mrf.mxu1 }
 0x22d   :  { %v1452_v13 = vpop.f32.mrf.mxu3 }
 0x22e   :  { %v1478_v14 = vpop.f32.mrf.mxu2  ;;  %v1453_v26 = vadd.f32 %v2530_v20, %v1452_v13 }
 0x22f   :  { %v1467_v15 = vpop.f32.mrf.mxu0 }
 0x230   :  { %v1493_v16 = vpop.f32.mrf.mxu1  ;;  %v1466_v29 = vadd.f32 %v1465_v11, %v1453_v26 }
 0x231   :  { %v2533_v16 = vld [vmem:[%s3129_s4 + $0x5] ss:$0 sm:$0xff] }
 0x232   :  { %v1479_v33 = vadd.f32 %v1478_v14, %v1466_v29 }
 0x234   :  { %v1492_v34 = vadd.f32 %v1491_v12, %v1479_v33 }
 0x235   :  { %v1454_v17 = vpop.f32.mrf.mxu3 }
 0x236   :  { %v1480_v18 = vpop.f32.mrf.mxu2 }
 0x237   :  { %v1517_v21 = vpop.f32.mrf.mxu0 }
 0x238   :  { %v1543_v23 = vpop.f32.mrf.mxu1 }
 0x23d   :  { %v1504_v24 = vpop.f32.mrf.mxu3 }
 0x23e   :  { %v1530_v19 = vpop.f32.mrf.mxu2  ;;  %v1505_v37 = vadd.f32 %v1504_v24, %v1492_v34 }
 0x23f   :  { %v1519_v22 = vpop.f32.mrf.mxu0 }
 0x240   :  { %v1545_v25 = vpop.f32.mrf.mxu1  ;;  %v1518_v40 = vadd.f32 %v1517_v21, %v1505_v37 }
 0x242   :  { %v1531_v44 = vadd.f32 %v1530_v19, %v1518_v40 }
 0x244   :  { %v1544_v47 = vadd.f32 %v1543_v23, %v1531_v44 }
 0x245   :  { %v1506_v27 = vpop.f32.mrf.mxu3 }
 0x246   :  { %v1532_v28 = vpop.f32.mrf.mxu2 }
 0x248   :  { %v1569_v31 = vpop.f32.mrf.mxu0 }
 0x24b   :  { %v1595_v32 = vpop.f32.mrf.mxu1 }
 0x24e   :  { %v1556_v35 = vpop.f32.mrf.mxu3 }
 0x24f   :  { %v1557_v48 = vadd.f32 %v1556_v35, %v1544_v47 }
 0x250   :  { %v1571_v38 = vpop.f32.mrf.mxu0 }
 0x251   :  { %v1582_v36 = vpop.f32.mrf.mxu2  ;;  %v1570_v49 = vadd.f32 %v1569_v31, %v1557_v48 }
 0x253   :  { %v1597_v39 = vpop.f32.mrf.mxu1  ;;  %v1583_v51 = vadd.f32 %v1582_v36, %v1570_v49 }
 0x255   :  { %v1596_v53 = vadd.f32 %v1595_v32, %v1583_v51 }
 0x256   :  { %v1558_v42 = vpop.f32.mrf.mxu3 }
 0x259   :  { %v1584_v43 = vpop.f32.mrf.mxu2 }
 0x268   :  { %v1621_v50 = vpop.f32.mrf.mxu0 }
 0x269   :  { %v1647_v52 = vpop.f32.mrf.mxu1 }
 0x26e   :  { %v1608_v54 = vpop.f32.mrf.mxu3 }
 0x26f   :  { %v1609_v55 = vadd.f32 %v1608_v54, %v1596_v53  ;;  %v1634_v56 = vpop.f32.mrf.mxu2 }
 0x270   :  { %v1623_v57 = vpop.f32.mrf.mxu0 }
 0x271   :  { %v1622_v58 = vadd.f32 %v1621_v50, %v1609_v55  ;;  %v1649_v59 = vpop.f32.mrf.mxu1 }
 0x273   :  { %v1635_v60 = vadd.f32 %v1634_v56, %v1622_v58 }
 0x275   :  { %v1648_v61 = vadd.f32 %v1647_v52, %v1635_v60 }
 0x276   :  { %v1610_v62 = vpop.f32.mrf.mxu3 }
 0x277   :  { %v1651_v63 = vmax.f32 %v1648_v61, 0.0  ;;  %v1636_v0 = vpop.f32.mrf.mxu2 }
 0x279   :  { %v1652_v1 = vpack.c.bf16 %v1651_v63, %v1651_v63 }
 0x27b   :  { %2348 = vmatmul.msk.bf16.vlgmr.msra.gmra.mxu3 %vm1666_vm13, %v1652_v1 }
 0x2fe   :  { %v1679_v5 = vpop.f32.mrf.mxu3 }
 0x2ff   :  { %v1680_v6 = vadd.f32 %v2531_v4, %v1679_v5 }
 0x301   :  { %v1683_v7 = vmax.f32 %v1680_v6, 0.0 }
 0x303   :  { %v1684_v8 = vpack.c.bf16 %v1683_v7, %v1683_v7 }
 0x305   :  { %2357 = vmatmul.msk.bf16.vlgmr.msrb.gmra.mxu0 %vm1666_vm13, %v1684_v8 }
 0x306   :  { %v1681_v9 = vpop.f32.mrf.mxu3 }
 0x382   :  { %v1710_v11 = vpop.f32.mrf.mxu0 }
 0x383   :  { %v1711_v12 = vadd.f32 %v2532_v10, %v1710_v11 }
 0x385   :  { %v1714_v13 = vmax.f32 %v1711_v12, 0.0 }
 0x387   :  { %v1715_v14 = vpack.c.bf16 %v1714_v13, %v1714_v13 }
 0x389   :  { %2366 = vmatmul.msk.bf16.vlgmr.msrb.gmra.mxu2 %vm1666_vm13, %v1715_v14 }
 0x38a   :  { %v1712_v15 = vpop.f32.mrf.mxu0 }
 0x40c   :  { %v1740_v17 = vpop.f32.mrf.mxu2 }
 0x40d   :  { %v1745_v18 = vadd.f32 %v2533_v16, %v1740_v17 }
 0x40f   :  { %1747 = vst.msk [vmem:[#allocation2] sm:$0x3] %vm1746_vm14, %v1745_v18 }
 0x410   :  { %1758 = dma.vmem_to_hbm [thread:$0]  %s1754_s8, 32, %s1756_s10, [#allocation3]  }
 0x414   :  { %v1742_v21 = vpop.f32.mrf.mxu2 }
 0x415   :  { %2558 = dma.done.wait [#allocation3], 32  }
 0x416   :  { %2559 = vsyncadd [#allocation3], 4294967264 }
 0x417   :  { %1763 = vsyncpa [#allocation3], 1 }

</bundles_post_ra>
